<compile_context>
chip_gen: v5e
topology: v5e:2x2
jax: 0.10.0
libtpu: 0.0.40
codegen_flags: <defaults>
</compile_context>

<pallas_src>
import functools

import jax
import jax.numpy as jnp
from jax.experimental import pallas as pl
from jax.experimental.pallas import tpu as pltpu

NEG_SLOPE = 0.2   # GATConv default negative_slope
LN_EPS = 1e-5     # pyg LayerNorm default eps


# ----------------------------------------------------------------------------
# pallas_call helper: single grid step, full-array blocks (shapes are tiny)
# ----------------------------------------------------------------------------
def _pallas_full(kernel, inputs, out_shapes):
    multi = isinstance(out_shapes, (tuple, list))
    outs = list(out_shapes) if multi else [out_shapes]
    res = pl.pallas_call(
        kernel,
        grid=(1,),
        in_specs=[pl.BlockSpec(a.shape, lambda i, nd=a.ndim: (0,) * nd)
                  for a in inputs],
        out_specs=[pl.BlockSpec(o.shape, lambda i, nd=len(o.shape): (0,) * nd)
                   for o in outs],
        out_shape=outs,
        compiler_params=pltpu.CompilerParams(
            dimension_semantics=("arbitrary",)),
    )(*inputs)
    return tuple(res) if multi else res[0]


# ----------------------------------------------------------------------------
# Fused node-level kernel: 3x GATConv + 3x graph-LayerNorm(+ReLU) + TopK score
# ----------------------------------------------------------------------------
def _fused_gnn_kernel(x_ref, adj_ref, oh_ref, oht_ref, inv12_ref, inv3_ref,
                      w1_ref, b1_ref, g1_ref, be1_ref,
                      w2_ref, b2_ref, g2_ref, be2_ref,
                      w3_ref, b3_ref, g3_ref, be3_ref,
                      pw_ref, o_ref, *, heads, out_ch, out_w):
    adj = adj_ref[...]                  # [N, N]
    mask = adj > 0.0                    # edge mask computed ONCE, reused below
    oh = oh_ref[...]                    # [N, G]
    oht = oht_ref[...]                  # [G, N]
    n = adj.shape[0]
    hc = heads * out_ch

    def gat(xin, w_ref, b_ref, concat):
        # One MXU call: x @ [W | W·a_src | W·a_dst] -> features + both
        # attention projections already reduced (no per-head VPU reductions).
        proj = jnp.dot(xin, w_ref[...], preferred_element_type=jnp.float32)
        # a_src in row (lane) layout via a single small XLU transpose.
        a_src_rows = jnp.transpose(proj[:, hc:hc + heads])          # [H, N]
        head_outs = []
        # TODO(synk): for heads > 1, switch to lax.fori_loop writing into a
        # [N, H*C] scratch slab to bound [N,N] live ranges.
        for h in range(heads):
            xh = proj[:, h * out_ch:(h + 1) * out_ch]               # [N, C]
            a_dst = proj[:, hc + heads + h:hc + heads + h + 1]      # [N, 1]
            src_row = a_src_rows[h:h + 1, :]                        # [1, N]
            # logits[i, j] = a_dst[i] + a_src[j]  (pure VPU broadcast, no MXU)
            e = a_dst + src_row                                     # [N, N]
            e = jnp.where(e > 0, e, NEG_SLOPE * e)                  # leaky_relu
            e = jnp.where(mask, e, -1e30)                           # mask non-edges
            e = e - jnp.max(e, axis=-1, keepdims=True)
            p = jnp.exp(e)                    # masked entries underflow to 0
            inv_den = pl.reciprocal(jnp.sum(p, axis=-1, keepdims=True),
                                    approx=True)                    # EUP slot
            attn = p * inv_den                                      # softmax
            head_outs.append(jnp.dot(attn, xh,
                                     preferred_element_type=jnp.float32))
        if concat:
            out = head_outs[0] if heads == 1 else jnp.concatenate(head_outs, -1)
        else:
            out = head_outs[0]
            for t in head_outs[1:]:
                out = out + t
            out = out * (1.0 / heads)                               # mean over heads
        return out + b_ref[...]

    def gnorm(xin, g_ref, be_ref, inv_norm, relu):
        # pyg.nn.LayerNorm(mode='graph'): per-graph mean/var over node features.
        sums = jnp.dot(oht, xin, preferred_element_type=jnp.float32)       # [G, F]
        mean_g = jnp.sum(sums, axis=-1, keepdims=True) * inv_norm          # [G, 1]
        mean_n = jnp.dot(oh, mean_g, preferred_element_type=jnp.float32)   # [N, 1]
        xc = xin - mean_n
        sq = jnp.dot(oht, xc * xc, preferred_element_type=jnp.float32)     # [G, F]
        var_g = jnp.sum(sq, axis=-1, keepdims=True) * inv_norm             # [G, 1]
        inv_std_n = jnp.dot(oh, jax.lax.rsqrt(var_g + LN_EPS),
                            preferred_element_type=jnp.float32)            # [N, 1]
        out = xc * inv_std_n * g_ref[...] + be_ref[...]
        return jnp.maximum(out, 0.0) if relu else out

    inv12 = inv12_ref[...]
    inv3 = inv3_ref[...]

    h = gat(x_ref[...], w1_ref, b1_ref, concat=True)
    h = gnorm(h, g1_ref, be1_ref, inv12, True)        # relu fused; dropout=identity
    h = gat(h, w2_ref, b2_ref, concat=True)
    h = gnorm(h, g2_ref, be2_ref, inv12, True)
    h = gat(h, w3_ref, b3_ref, concat=False)
    h = gnorm(h, g3_ref, be3_ref, inv3, False)

    # TopKPooling score: tanh(h . w / ||w||)   (pw_ref pre-normalised on host)
    score = jnp.tanh(jnp.sum(h * pw_ref[...], axis=-1, keepdims=True))     # [N, 1]

    # Single lane-dense 128-wide store: [h | score | zero pad]
    pad = jnp.zeros((n, out_w - out_ch - 1), jnp.float32)
    o_ref[...] = jnp.concatenate([h, score, pad], axis=-1)


def _mlp_kernel(x_ref, w0_ref, b0_ref, w1_ref, b1_ref, w2_ref, b2_ref,
                out_ref, z_ref):
    """lin0 -> relu -> lin1 -> relu (=z) -> lin (=out)."""
    h = jnp.dot(x_ref[...], w0_ref[...], preferred_element_type=jnp.float32)
    h = jnp.maximum(h + b0_ref[...], 0.0)
    z = jnp.dot(h, w1_ref[...], preferred_element_type=jnp.float32)
    z = jnp.maximum(z + b1_ref[...], 0.0)
    z_ref[...] = z
    out_ref[...] = jnp.dot(z, w2_ref[...],
                           preferred_element_type=jnp.float32) + b2_ref[...]


# ----------------------------------------------------------------------------
# Host-side param prep: fold attention vectors into the feature matmul
# ----------------------------------------------------------------------------
def _augment_w(w, asrc, adst, heads, out_ch):
    """[Fin, H*C] -> [Fin, H*C + 2H] = [W | W·a_src | W·a_dst]."""
    fin = w.shape[0]
    w3 = w.reshape(fin, heads, out_ch)
    w_asrc = jnp.einsum('fhc,hc->fh', w3, asrc)    # [Fin, H]
    w_adst = jnp.einsum('fhc,hc->fh', w3, adst)    # [Fin, H]
    return jnp.concatenate([w, w_asrc, w_adst], axis=-1)


# ----------------------------------------------------------------------------
# Model forward (glue + kernel calls)
# ----------------------------------------------------------------------------
def gat_model_forward(params, x, edge_index, batch, *, num_graphs, heads,
                      hidden_dim, k):
    f32 = jnp.float32
    N = x.shape[0]
    hc = heads * hidden_dim

    # Dense adjacency with self-loops: adj[target, source] = 1.
    adj = jnp.zeros((N, N), f32)
    adj = adj.at[edge_index[1], edge_index[0]].set(1.0)
    adj = adj.at[jnp.arange(N), jnp.arange(N)].set(1.0)

    onehot = (batch[:, None] == jnp.arange(num_graphs)[None, :]).astype(f32)  # [N,G]
    onehot_t = onehot.T                                                       # [G,N]
    counts = jnp.sum(onehot, axis=0, keepdims=True).T                         # [G,1]
    inv12 = 1.0 / jnp.maximum(counts * float(hc), 1.0)
    inv3 = 1.0 / jnp.maximum(counts * float(hidden_dim), 1.0)

    w1 = _augment_w(params['w1'], params['asrc1'], params['adst1'], heads, hidden_dim)
    w2 = _augment_w(params['w2'], params['asrc2'], params['adst2'], heads, hidden_dim)
    w3 = _augment_w(params['w3'], params['asrc3'], params['adst3'], heads, hidden_dim)
    pw = params['pool_w'] * jax.lax.rsqrt(
        jnp.sum(params['pool_w'] * params['pool_w'], axis=-1, keepdims=True))

    out_w = max(128, ((hidden_dim + 1 + 127) // 128) * 128)   # lane-dense output
    kern = functools.partial(_fused_gnn_kernel, heads=heads,
                             out_ch=hidden_dim, out_w=out_w)
    fused = _pallas_full(
        kern,
        [x, adj, onehot, onehot_t, inv12, inv3,
         w1, params['b1'], params['g1'], params['be1'],
         w2, params['b2'], params['g2'], params['be2'],
         w3, params['b3'], params['g3'], params['be3'],
         pw],
        jax.ShapeDtypeStruct((N, out_w), f32))
    h = fused[:, :hidden_dim]          # norm3 output
    score = fused[:, hidden_dim]       # TopK score

    # TODO(synk): per-graph top-k selection (sort/gather) stays in plain JAX
    # glue (vmapped over graphs) between the two Pallas calls.
    def per_graph(g):
        masked = jnp.where(batch == g, score, -jnp.inf)
        vals, idx = jax.lax.top_k(masked, k)            # descending per graph
        return (h[idx] * vals[:, None]).reshape(-1)

    xg = jax.vmap(per_graph)(jnp.arange(num_graphs))    # [G, k*hidden] == view(G,-1)

    out, z = _pallas_full(
        _mlp_kernel,
        [xg, params['lw0'], params['lb0'], params['lw1'], params['lb1'],
         params['lw2'], params['lb2']],
        (jax.ShapeDtypeStruct((num_graphs, params['lw2'].shape[1]), f32),
         jax.ShapeDtypeStruct((num_graphs, hidden_dim), f32)))
    return out, z


# ----------------------------------------------------------------------------
# Deterministic parameter init (xavier-uniform for dim>1, zeros for biases,
# ones/zeros for LayerNorm affine) — mirrors _reset_parameters.
# ----------------------------------------------------------------------------
def init_params(key, node_feature_dim, hidden_dim, output_dim, heads, k):
    f32 = jnp.float32
    hh = heads * hidden_dim
    ks = jax.random.split(key, 13)

    def xav(kk, fan_in, fan_out, shape):
        b = (6.0 / (fan_in + fan_out)) ** 0.5
        return jax.random.uniform(kk, shape, f32, -b, b)

    p = {}
    p['w1'] = xav(ks[0], node_feature_dim, hh, (node_feature_dim, hh))
    p['asrc1'] = xav(ks[1], hidden_dim, 1, (heads, hidden_dim))
    p['adst1'] = xav(ks[2], hidden_dim, 1, (heads, hidden_dim))
    p['b1'] = jnp.zeros((1, hh), f32)
    p['w2'] = xav(ks[3], hh, hh, (hh, hh))
    p['asrc2'] = xav(ks[4], hidden_dim, 1, (heads, hidden_dim))
    p['adst2'] = xav(ks[5], hidden_dim, 1, (heads, hidden_dim))
    p['b2'] = jnp.zeros((1, hh), f32)
    p['w3'] = xav(ks[6], hh, hh, (hh, hh))
    p['asrc3'] = xav(ks[7], hidden_dim, 1, (heads, hidden_dim))
    p['adst3'] = xav(ks[8], hidden_dim, 1, (heads, hidden_dim))
    p['b3'] = jnp.zeros((1, hidden_dim), f32)
    p['g1'], p['be1'] = jnp.ones((1, hh), f32), jnp.zeros((1, hh), f32)
    p['g2'], p['be2'] = jnp.ones((1, hh), f32), jnp.zeros((1, hh), f32)
    p['g3'], p['be3'] = jnp.ones((1, hidden_dim), f32), jnp.zeros((1, hidden_dim), f32)
    p['pool_w'] = xav(ks[9], hidden_dim, 1, (1, hidden_dim))
    p['lw0'] = xav(ks[10], k * hidden_dim, hidden_dim, (k * hidden_dim, hidden_dim))
    p['lb0'] = jnp.zeros((1, hidden_dim), f32)
    p['lw1'] = xav(ks[11], hidden_dim, hidden_dim, (hidden_dim, hidden_dim))
    p['lb1'] = jnp.zeros((1, hidden_dim), f32)
    p['lw2'] = xav(ks[12], hidden_dim, output_dim, (hidden_dim, output_dim))
    p['lb2'] = jnp.zeros((1, output_dim), f32)
    return p


if __name__ == "__main__":
    node_feature_dim, hidden_dim, output_dim = 8, 16, 4
    heads, k = 1, 4                       # nheads=1 (default), k nodes kept per graph
    nodes_per_graph, num_graphs = 8, 2
    N = nodes_per_graph * num_graphs

    key = jax.random.PRNGKey(0)
    kx, kp = jax.random.split(key)
    x = jax.random.normal(kx, (N, node_feature_dim), jnp.float32)
    batch = jnp.repeat(jnp.arange(num_graphs, dtype=jnp.int32), nodes_per_graph)

    # Bidirectional ring within each graph.
    src, dst = [], []
    for g in range(num_graphs):
        base = g * nodes_per_graph
        for i in range(nodes_per_graph):
            j = (i + 1) % nodes_per_graph
            src += [base + i, base + j]
            dst += [base + j, base + i]
    edge_index = jnp.array([src, dst], dtype=jnp.int32)   # [2, E]

    params = init_params(kp, node_feature_dim, hidden_dim, output_dim, heads, k)

    out, z = gat_model_forward(params, x, edge_index, batch,
                               num_graphs=num_graphs, heads=heads,
                               hidden_dim=hidden_dim, k=k)
    jax.block_until_ready((out, z))
    assert out.shape == (num_graphs, output_dim)
    assert z.shape == (num_graphs, hidden_dim)
    print("KERNEL_OK")
</pallas_src>

<mosaic_0001>
module attributes {stable_mosaic.version = 11 : i64} {
  func.func @_fused_gnn_kernel(%arg0: i32, %arg1: memref<16x8xf32, #tpu.memory_space<vmem>>, %arg2: memref<16x16xf32, #tpu.memory_space<vmem>>, %arg3: memref<16x2xf32, #tpu.memory_space<vmem>>, %arg4: memref<2x16xf32, #tpu.memory_space<vmem>>, %arg5: memref<2x1xf32, #tpu.memory_space<vmem>>, %arg6: memref<2x1xf32, #tpu.memory_space<vmem>>, %arg7: memref<8x18xf32, #tpu.memory_space<vmem>>, %arg8: memref<1x16xf32, #tpu.memory_space<vmem>>, %arg9: memref<1x16xf32, #tpu.memory_space<vmem>>, %arg10: memref<1x16xf32, #tpu.memory_space<vmem>>, %arg11: memref<16x18xf32, #tpu.memory_space<vmem>>, %arg12: memref<1x16xf32, #tpu.memory_space<vmem>>, %arg13: memref<1x16xf32, #tpu.memory_space<vmem>>, %arg14: memref<1x16xf32, #tpu.memory_space<vmem>>, %arg15: memref<16x18xf32, #tpu.memory_space<vmem>>, %arg16: memref<1x16xf32, #tpu.memory_space<vmem>>, %arg17: memref<1x16xf32, #tpu.memory_space<vmem>>, %arg18: memref<1x16xf32, #tpu.memory_space<vmem>>, %arg19: memref<1x16xf32, #tpu.memory_space<vmem>>, %arg20: memref<16x128xf32, #tpu.memory_space<vmem>>) attributes {dimension_semantics = [#tpu.dimension_semantics<arbitrary>], iteration_bounds = array<i64: 1>, scalar_prefetch = 0 : i64, scratch_operands = 0 : i64, tpu.core_type = #tpu.core_type<tc>, window_params = [{pipeline_mode = #tpu.pipeline_mode<synchronous>, transform_indices = @transform_0, window_bounds = array<i64: 16, 8>}, {pipeline_mode = #tpu.pipeline_mode<synchronous>, transform_indices = @transform_1, window_bounds = array<i64: 16, 16>}, {pipeline_mode = #tpu.pipeline_mode<synchronous>, transform_indices = @transform_2, window_bounds = array<i64: 16, 2>}, {pipeline_mode = #tpu.pipeline_mode<synchronous>, transform_indices = @transform_3, window_bounds = array<i64: 2, 16>}, {pipeline_mode = #tpu.pipeline_mode<synchronous>, transform_indices = @transform_4, window_bounds = array<i64: 2, 1>}, {pipeline_mode = #tpu.pipeline_mode<synchronous>, transform_indices = @transform_5, window_bounds = array<i64: 2, 1>}, {pipeline_mode = #tpu.pipeline_mode<synchronous>, transform_indices = @transform_6, window_bounds = array<i64: 8, 18>}, {pipeline_mode = #tpu.pipeline_mode<synchronous>, transform_indices = @transform_7, window_bounds = array<i64: 1, 16>}, {pipeline_mode = #tpu.pipeline_mode<synchronous>, transform_indices = @transform_8, window_bounds = array<i64: 1, 16>}, {pipeline_mode = #tpu.pipeline_mode<synchronous>, transform_indices = @transform_9, window_bounds = array<i64: 1, 16>}, {pipeline_mode = #tpu.pipeline_mode<synchronous>, transform_indices = @transform_10, window_bounds = array<i64: 16, 18>}, {pipeline_mode = #tpu.pipeline_mode<synchronous>, transform_indices = @transform_11, window_bounds = array<i64: 1, 16>}, {pipeline_mode = #tpu.pipeline_mode<synchronous>, transform_indices = @transform_12, window_bounds = array<i64: 1, 16>}, {pipeline_mode = #tpu.pipeline_mode<synchronous>, transform_indices = @transform_13, window_bounds = array<i64: 1, 16>}, {pipeline_mode = #tpu.pipeline_mode<synchronous>, transform_indices = @transform_14, window_bounds = array<i64: 16, 18>}, {pipeline_mode = #tpu.pipeline_mode<synchronous>, transform_indices = @transform_15, window_bounds = array<i64: 1, 16>}, {pipeline_mode = #tpu.pipeline_mode<synchronous>, transform_indices = @transform_16, window_bounds = array<i64: 1, 16>}, {pipeline_mode = #tpu.pipeline_mode<synchronous>, transform_indices = @transform_17, window_bounds = array<i64: 1, 16>}, {pipeline_mode = #tpu.pipeline_mode<synchronous>, transform_indices = @transform_18, window_bounds = array<i64: 1, 16>}, {pipeline_mode = #tpu.pipeline_mode<synchronous>, transform_indices = @transform_19, window_bounds = array<i64: 16, 128>}]} {
    %c0 = arith.constant 0 : index
    %c0_0 = arith.constant 0 : index
    %0 = vector.load %arg2[%c0, %c0_0] : memref<16x16xf32, #tpu.memory_space<vmem>>, vector<16x16xf32>
    %cst = arith.constant 0.000000e+00 : f32
    %1 = vector.broadcast %cst : f32 to vector<16x16xf32>
    %2 = arith.cmpf ogt, %0, %1 : vector<16x16xf32>
    %c0_1 = arith.constant 0 : index
    %c0_2 = arith.constant 0 : index
    %3 = vector.load %arg3[%c0_1, %c0_2] : memref<16x2xf32, #tpu.memory_space<vmem>>, vector<16x2xf32>
    %c0_3 = arith.constant 0 : index
    %c0_4 = arith.constant 0 : index
    %4 = vector.load %arg4[%c0_3, %c0_4] : memref<2x16xf32, #tpu.memory_space<vmem>>, vector<2x16xf32>
    %c0_5 = arith.constant 0 : index
    %c0_6 = arith.constant 0 : index
    %5 = vector.load %arg5[%c0_5, %c0_6] : memref<2x1xf32, #tpu.memory_space<vmem>>, vector<2x1xf32>
    %c0_7 = arith.constant 0 : index
    %c0_8 = arith.constant 0 : index
    %6 = vector.load %arg6[%c0_7, %c0_8] : memref<2x1xf32, #tpu.memory_space<vmem>>, vector<2x1xf32>
    %c0_9 = arith.constant 0 : index
    %c0_10 = arith.constant 0 : index
    %7 = vector.load %arg1[%c0_9, %c0_10] : memref<16x8xf32, #tpu.memory_space<vmem>>, vector<16x8xf32>
    %c0_11 = arith.constant 0 : index
    %c0_12 = arith.constant 0 : index
    %8 = vector.load %arg7[%c0_11, %c0_12] : memref<8x18xf32, #tpu.memory_space<vmem>>, vector<8x18xf32>
    %cst_13 = arith.constant dense<0.000000e+00> : vector<16x18xf32>
    %9 = tpu.matmul %7, %8, %cst_13 {dimension_numbers = #tpu.dot_dimension_numbers<[1], [0], [0], [1], [0, 0, 1, 1], [], []>} : vector<16x8xf32>, vector<8x18xf32>, vector<16x18xf32> -> vector<16x18xf32>
    %10 = vector.extract_strided_slice %9 {offsets = [0, 16], sizes = [16, 1], strides = [1, 1]} : vector<16x18xf32> to vector<16x1xf32>
    %11 = tpu.transpose %10, [1, 0] : vector<16x1xf32> -> vector<1x16xf32>
    %12 = vector.extract_strided_slice %9 {offsets = [0, 0], sizes = [16, 16], strides = [1, 1]} : vector<16x18xf32> to vector<16x16xf32>
    %13 = vector.extract_strided_slice %9 {offsets = [0, 17], sizes = [16, 1], strides = [1, 1]} : vector<16x18xf32> to vector<16x1xf32>
    %14 = vector.broadcast %13 : vector<16x1xf32> to vector<16x16xf32>
    %15 = vector.broadcast %11 : vector<1x16xf32> to vector<16x16xf32>
    %16 = arith.addf %14, %15 : vector<16x16xf32>
    %cst_14 = arith.constant 0.000000e+00 : f32
    %17 = vector.broadcast %cst_14 : f32 to vector<16x16xf32>
    %18 = arith.cmpf ogt, %16, %17 : vector<16x16xf32>
    %cst_15 = arith.constant 2.000000e-01 : f32
    %19 = vector.broadcast %cst_15 : f32 to vector<16x16xf32>
    %20 = arith.mulf %19, %16 : vector<16x16xf32>
    %21 = arith.select %18, %16, %20 : vector<16x16xi1>, vector<16x16xf32>
    %cst_16 = arith.constant -1.000000e+30 : f32
    %22 = vector.broadcast %cst_16 : f32 to vector<16x16xf32>
    %23 = arith.select %2, %21, %22 : vector<16x16xi1>, vector<16x16xf32>
    %cst_17 = arith.constant dense<0xFF800000> : vector<16xf32>
    %24 = vector.multi_reduction <maximumf>, %23, %cst_17 [1] : vector<16x16xf32> to vector<16xf32>
    %25 = vector.shape_cast %24 : vector<16xf32> to vector<16x1xf32>
    %26 = vector.broadcast %25 : vector<16x1xf32> to vector<16x16xf32>
    %27 = arith.subf %23, %26 : vector<16x16xf32>
    %28 = math.exp %27 : vector<16x16xf32>
    %cst_18 = arith.constant dense<0.000000e+00> : vector<16xf32>
    %29 = vector.multi_reduction <add>, %28, %cst_18 [1] : vector<16x16xf32> to vector<16xf32>
    %30 = vector.shape_cast %29 : vector<16xf32> to vector<16x1xf32>
    %31 = tpu.reciprocal %30 {approx = true} : vector<16x1xf32> -> vector<16x1xf32>
    %32 = vector.broadcast %31 : vector<16x1xf32> to vector<16x16xf32>
    %33 = arith.mulf %28, %32 : vector<16x16xf32>
    %cst_19 = arith.constant dense<0.000000e+00> : vector<16x16xf32>
    %34 = tpu.matmul %33, %12, %cst_19 {dimension_numbers = #tpu.dot_dimension_numbers<[1], [0], [0], [1], [0, 0, 1, 1], [], []>} : vector<16x16xf32>, vector<16x16xf32>, vector<16x16xf32> -> vector<16x16xf32>
    %c0_20 = arith.constant 0 : index
    %c0_21 = arith.constant 0 : index
    %35 = vector.load %arg8[%c0_20, %c0_21] : memref<1x16xf32, #tpu.memory_space<vmem>>, vector<1x16xf32>
    %36 = vector.broadcast %35 : vector<1x16xf32> to vector<16x16xf32>
    %37 = arith.addf %34, %36 : vector<16x16xf32>
    %cst_22 = arith.constant dense<0.000000e+00> : vector<2x16xf32>
    %38 = tpu.matmul %4, %37, %cst_22 {dimension_numbers = #tpu.dot_dimension_numbers<[1], [0], [0], [1], [0, 0, 1, 1], [], []>} : vector<2x16xf32>, vector<16x16xf32>, vector<2x16xf32> -> vector<2x16xf32>
    %cst_23 = arith.constant dense<0.000000e+00> : vector<2xf32>
    %39 = vector.multi_reduction <add>, %38, %cst_23 [1] : vector<2x16xf32> to vector<2xf32>
    %40 = vector.shape_cast %39 : vector<2xf32> to vector<2x1xf32>
    %41 = arith.mulf %40, %5 : vector<2x1xf32>
    %cst_24 = arith.constant dense<0.000000e+00> : vector<16x1xf32>
    %42 = tpu.matmul %3, %41, %cst_24 {dimension_numbers = #tpu.dot_dimension_numbers<[1], [0], [0], [1], [0, 0, 1, 1], [], []>} : vector<16x2xf32>, vector<2x1xf32>, vector<16x1xf32> -> vector<16x1xf32>
    %43 = vector.broadcast %42 : vector<16x1xf32> to vector<16x16xf32>
    %44 = arith.subf %37, %43 : vector<16x16xf32>
    %45 = arith.mulf %44, %44 : vector<16x16xf32>
    %cst_25 = arith.constant dense<0.000000e+00> : vector<2x16xf32>
    %46 = tpu.matmul %4, %45, %cst_25 {dimension_numbers = #tpu.dot_dimension_numbers<[1], [0], [0], [1], [0, 0, 1, 1], [], []>} : vector<2x16xf32>, vector<16x16xf32>, vector<2x16xf32> -> vector<2x16xf32>
    %cst_26 = arith.constant dense<0.000000e+00> : vector<2xf32>
    %47 = vector.multi_reduction <add>, %46, %cst_26 [1] : vector<2x16xf32> to vector<2xf32>
    %48 = vector.shape_cast %47 : vector<2xf32> to vector<2x1xf32>
    %49 = arith.mulf %48, %5 : vector<2x1xf32>
    %cst_27 = arith.constant 9.99999974E-6 : f32
    %50 = vector.broadcast %cst_27 : f32 to vector<2x1xf32>
    %51 = arith.addf %49, %50 : vector<2x1xf32>
    %52 = math.rsqrt %51 : vector<2x1xf32>
    %cst_28 = arith.constant dense<0.000000e+00> : vector<16x1xf32>
    %53 = tpu.matmul %3, %52, %cst_28 {dimension_numbers = #tpu.dot_dimension_numbers<[1], [0], [0], [1], [0, 0, 1, 1], [], []>} : vector<16x2xf32>, vector<2x1xf32>, vector<16x1xf32> -> vector<16x1xf32>
    %54 = vector.broadcast %53 : vector<16x1xf32> to vector<16x16xf32>
    %55 = arith.mulf %44, %54 : vector<16x16xf32>
    %c0_29 = arith.constant 0 : index
    %c0_30 = arith.constant 0 : index
    %56 = vector.load %arg9[%c0_29, %c0_30] : memref<1x16xf32, #tpu.memory_space<vmem>>, vector<1x16xf32>
    %57 = vector.broadcast %56 : vector<1x16xf32> to vector<16x16xf32>
    %58 = arith.mulf %55, %57 : vector<16x16xf32>
    %c0_31 = arith.constant 0 : index
    %c0_32 = arith.constant 0 : index
    %59 = vector.load %arg10[%c0_31, %c0_32] : memref<1x16xf32, #tpu.memory_space<vmem>>, vector<1x16xf32>
    %60 = vector.broadcast %59 : vector<1x16xf32> to vector<16x16xf32>
    %61 = arith.addf %58, %60 : vector<16x16xf32>
    %cst_33 = arith.constant 0.000000e+00 : f32
    %62 = vector.broadcast %cst_33 : f32 to vector<16x16xf32>
    %63 = arith.maximumf %61, %62 : vector<16x16xf32>
    %c0_34 = arith.constant 0 : index
    %c0_35 = arith.constant 0 : index
    %64 = vector.load %arg11[%c0_34, %c0_35] : memref<16x18xf32, #tpu.memory_space<vmem>>, vector<16x18xf32>
    %cst_36 = arith.constant dense<0.000000e+00> : vector<16x18xf32>
    %65 = tpu.matmul %63, %64, %cst_36 {dimension_numbers = #tpu.dot_dimension_numbers<[1], [0], [0], [1], [0, 0, 1, 1], [], []>} : vector<16x16xf32>, vector<16x18xf32>, vector<16x18xf32> -> vector<16x18xf32>
    %66 = vector.extract_strided_slice %65 {offsets = [0, 16], sizes = [16, 1], strides = [1, 1]} : vector<16x18xf32> to vector<16x1xf32>
    %67 = tpu.transpose %66, [1, 0] : vector<16x1xf32> -> vector<1x16xf32>
    %68 = vector.extract_strided_slice %65 {offsets = [0, 0], sizes = [16, 16], strides = [1, 1]} : vector<16x18xf32> to vector<16x16xf32>
    %69 = vector.extract_strided_slice %65 {offsets = [0, 17], sizes = [16, 1], strides = [1, 1]} : vector<16x18xf32> to vector<16x1xf32>
    %70 = vector.broadcast %69 : vector<16x1xf32> to vector<16x16xf32>
    %71 = vector.broadcast %67 : vector<1x16xf32> to vector<16x16xf32>
    %72 = arith.addf %70, %71 : vector<16x16xf32>
    %cst_37 = arith.constant 0.000000e+00 : f32
    %73 = vector.broadcast %cst_37 : f32 to vector<16x16xf32>
    %74 = arith.cmpf ogt, %72, %73 : vector<16x16xf32>
    %cst_38 = arith.constant 2.000000e-01 : f32
    %75 = vector.broadcast %cst_38 : f32 to vector<16x16xf32>
    %76 = arith.mulf %75, %72 : vector<16x16xf32>
    %77 = arith.select %74, %72, %76 : vector<16x16xi1>, vector<16x16xf32>
    %cst_39 = arith.constant -1.000000e+30 : f32
    %78 = vector.broadcast %cst_39 : f32 to vector<16x16xf32>
    %79 = arith.select %2, %77, %78 : vector<16x16xi1>, vector<16x16xf32>
    %cst_40 = arith.constant dense<0xFF800000> : vector<16xf32>
    %80 = vector.multi_reduction <maximumf>, %79, %cst_40 [1] : vector<16x16xf32> to vector<16xf32>
    %81 = vector.shape_cast %80 : vector<16xf32> to vector<16x1xf32>
    %82 = vector.broadcast %81 : vector<16x1xf32> to vector<16x16xf32>
    %83 = arith.subf %79, %82 : vector<16x16xf32>
    %84 = math.exp %83 : vector<16x16xf32>
    %cst_41 = arith.constant dense<0.000000e+00> : vector<16xf32>
    %85 = vector.multi_reduction <add>, %84, %cst_41 [1] : vector<16x16xf32> to vector<16xf32>
    %86 = vector.shape_cast %85 : vector<16xf32> to vector<16x1xf32>
    %87 = tpu.reciprocal %86 {approx = true} : vector<16x1xf32> -> vector<16x1xf32>
    %88 = vector.broadcast %87 : vector<16x1xf32> to vector<16x16xf32>
    %89 = arith.mulf %84, %88 : vector<16x16xf32>
    %cst_42 = arith.constant dense<0.000000e+00> : vector<16x16xf32>
    %90 = tpu.matmul %89, %68, %cst_42 {dimension_numbers = #tpu.dot_dimension_numbers<[1], [0], [0], [1], [0, 0, 1, 1], [], []>} : vector<16x16xf32>, vector<16x16xf32>, vector<16x16xf32> -> vector<16x16xf32>
    %c0_43 = arith.constant 0 : index
    %c0_44 = arith.constant 0 : index
    %91 = vector.load %arg12[%c0_43, %c0_44] : memref<1x16xf32, #tpu.memory_space<vmem>>, vector<1x16xf32>
    %92 = vector.broadcast %91 : vector<1x16xf32> to vector<16x16xf32>
    %93 = arith.addf %90, %92 : vector<16x16xf32>
    %cst_45 = arith.constant dense<0.000000e+00> : vector<2x16xf32>
    %94 = tpu.matmul %4, %93, %cst_45 {dimension_numbers = #tpu.dot_dimension_numbers<[1], [0], [0], [1], [0, 0, 1, 1], [], []>} : vector<2x16xf32>, vector<16x16xf32>, vector<2x16xf32> -> vector<2x16xf32>
    %cst_46 = arith.constant dense<0.000000e+00> : vector<2xf32>
    %95 = vector.multi_reduction <add>, %94, %cst_46 [1] : vector<2x16xf32> to vector<2xf32>
    %96 = vector.shape_cast %95 : vector<2xf32> to vector<2x1xf32>
    %97 = arith.mulf %96, %5 : vector<2x1xf32>
    %cst_47 = arith.constant dense<0.000000e+00> : vector<16x1xf32>
    %98 = tpu.matmul %3, %97, %cst_47 {dimension_numbers = #tpu.dot_dimension_numbers<[1], [0], [0], [1], [0, 0, 1, 1], [], []>} : vector<16x2xf32>, vector<2x1xf32>, vector<16x1xf32> -> vector<16x1xf32>
    %99 = vector.broadcast %98 : vector<16x1xf32> to vector<16x16xf32>
    %100 = arith.subf %93, %99 : vector<16x16xf32>
    %101 = arith.mulf %100, %100 : vector<16x16xf32>
    %cst_48 = arith.constant dense<0.000000e+00> : vector<2x16xf32>
    %102 = tpu.matmul %4, %101, %cst_48 {dimension_numbers = #tpu.dot_dimension_numbers<[1], [0], [0], [1], [0, 0, 1, 1], [], []>} : vector<2x16xf32>, vector<16x16xf32>, vector<2x16xf32> -> vector<2x16xf32>
    %cst_49 = arith.constant dense<0.000000e+00> : vector<2xf32>
    %103 = vector.multi_reduction <add>, %102, %cst_49 [1] : vector<2x16xf32> to vector<2xf32>
    %104 = vector.shape_cast %103 : vector<2xf32> to vector<2x1xf32>
    %105 = arith.mulf %104, %5 : vector<2x1xf32>
    %cst_50 = arith.constant 9.99999974E-6 : f32
    %106 = vector.broadcast %cst_50 : f32 to vector<2x1xf32>
    %107 = arith.addf %105, %106 : vector<2x1xf32>
    %108 = math.rsqrt %107 : vector<2x1xf32>
    %cst_51 = arith.constant dense<0.000000e+00> : vector<16x1xf32>
    %109 = tpu.matmul %3, %108, %cst_51 {dimension_numbers = #tpu.dot_dimension_numbers<[1], [0], [0], [1], [0, 0, 1, 1], [], []>} : vector<16x2xf32>, vector<2x1xf32>, vector<16x1xf32> -> vector<16x1xf32>
    %110 = vector.broadcast %109 : vector<16x1xf32> to vector<16x16xf32>
    %111 = arith.mulf %100, %110 : vector<16x16xf32>
    %c0_52 = arith.constant 0 : index
    %c0_53 = arith.constant 0 : index
    %112 = vector.load %arg13[%c0_52, %c0_53] : memref<1x16xf32, #tpu.memory_space<vmem>>, vector<1x16xf32>
    %113 = vector.broadcast %112 : vector<1x16xf32> to vector<16x16xf32>
    %114 = arith.mulf %111, %113 : vector<16x16xf32>
    %c0_54 = arith.constant 0 : index
    %c0_55 = arith.constant 0 : index
    %115 = vector.load %arg14[%c0_54, %c0_55] : memref<1x16xf32, #tpu.memory_space<vmem>>, vector<1x16xf32>
    %116 = vector.broadcast %115 : vector<1x16xf32> to vector<16x16xf32>
    %117 = arith.addf %114, %116 : vector<16x16xf32>
    %cst_56 = arith.constant 0.000000e+00 : f32
    %118 = vector.broadcast %cst_56 : f32 to vector<16x16xf32>
    %119 = arith.maximumf %117, %118 : vector<16x16xf32>
    %c0_57 = arith.constant 0 : index
    %c0_58 = arith.constant 0 : index
    %120 = vector.load %arg15[%c0_57, %c0_58] : memref<16x18xf32, #tpu.memory_space<vmem>>, vector<16x18xf32>
    %cst_59 = arith.constant dense<0.000000e+00> : vector<16x18xf32>
    %121 = tpu.matmul %119, %120, %cst_59 {dimension_numbers = #tpu.dot_dimension_numbers<[1], [0], [0], [1], [0, 0, 1, 1], [], []>} : vector<16x16xf32>, vector<16x18xf32>, vector<16x18xf32> -> vector<16x18xf32>
    %122 = vector.extract_strided_slice %121 {offsets = [0, 16], sizes = [16, 1], strides = [1, 1]} : vector<16x18xf32> to vector<16x1xf32>
    %123 = tpu.transpose %122, [1, 0] : vector<16x1xf32> -> vector<1x16xf32>
    %124 = vector.extract_strided_slice %121 {offsets = [0, 0], sizes = [16, 16], strides = [1, 1]} : vector<16x18xf32> to vector<16x16xf32>
    %125 = vector.extract_strided_slice %121 {offsets = [0, 17], sizes = [16, 1], strides = [1, 1]} : vector<16x18xf32> to vector<16x1xf32>
    %126 = vector.broadcast %125 : vector<16x1xf32> to vector<16x16xf32>
    %127 = vector.broadcast %123 : vector<1x16xf32> to vector<16x16xf32>
    %128 = arith.addf %126, %127 : vector<16x16xf32>
    %cst_60 = arith.constant 0.000000e+00 : f32
    %129 = vector.broadcast %cst_60 : f32 to vector<16x16xf32>
    %130 = arith.cmpf ogt, %128, %129 : vector<16x16xf32>
    %cst_61 = arith.constant 2.000000e-01 : f32
    %131 = vector.broadcast %cst_61 : f32 to vector<16x16xf32>
    %132 = arith.mulf %131, %128 : vector<16x16xf32>
    %133 = arith.select %130, %128, %132 : vector<16x16xi1>, vector<16x16xf32>
    %cst_62 = arith.constant -1.000000e+30 : f32
    %134 = vector.broadcast %cst_62 : f32 to vector<16x16xf32>
    %135 = arith.select %2, %133, %134 : vector<16x16xi1>, vector<16x16xf32>
    %cst_63 = arith.constant dense<0xFF800000> : vector<16xf32>
    %136 = vector.multi_reduction <maximumf>, %135, %cst_63 [1] : vector<16x16xf32> to vector<16xf32>
    %137 = vector.shape_cast %136 : vector<16xf32> to vector<16x1xf32>
    %138 = vector.broadcast %137 : vector<16x1xf32> to vector<16x16xf32>
    %139 = arith.subf %135, %138 : vector<16x16xf32>
    %140 = math.exp %139 : vector<16x16xf32>
    %cst_64 = arith.constant dense<0.000000e+00> : vector<16xf32>
    %141 = vector.multi_reduction <add>, %140, %cst_64 [1] : vector<16x16xf32> to vector<16xf32>
    %142 = vector.shape_cast %141 : vector<16xf32> to vector<16x1xf32>
    %143 = tpu.reciprocal %142 {approx = true} : vector<16x1xf32> -> vector<16x1xf32>
    %144 = vector.broadcast %143 : vector<16x1xf32> to vector<16x16xf32>
    %145 = arith.mulf %140, %144 : vector<16x16xf32>
    %cst_65 = arith.constant dense<0.000000e+00> : vector<16x16xf32>
    %146 = tpu.matmul %145, %124, %cst_65 {dimension_numbers = #tpu.dot_dimension_numbers<[1], [0], [0], [1], [0, 0, 1, 1], [], []>} : vector<16x16xf32>, vector<16x16xf32>, vector<16x16xf32> -> vector<16x16xf32>
    %cst_66 = arith.constant 1.000000e+00 : f32
    %147 = vector.broadcast %cst_66 : f32 to vector<16x16xf32>
    %148 = arith.mulf %146, %147 : vector<16x16xf32>
    %c0_67 = arith.constant 0 : index
    %c0_68 = arith.constant 0 : index
    %149 = vector.load %arg16[%c0_67, %c0_68] : memref<1x16xf32, #tpu.memory_space<vmem>>, vector<1x16xf32>
    %150 = vector.broadcast %149 : vector<1x16xf32> to vector<16x16xf32>
    %151 = arith.addf %148, %150 : vector<16x16xf32>
    %cst_69 = arith.constant dense<0.000000e+00> : vector<2x16xf32>
    %152 = tpu.matmul %4, %151, %cst_69 {dimension_numbers = #tpu.dot_dimension_numbers<[1], [0], [0], [1], [0, 0, 1, 1], [], []>} : vector<2x16xf32>, vector<16x16xf32>, vector<2x16xf32> -> vector<2x16xf32>
    %cst_70 = arith.constant dense<0.000000e+00> : vector<2xf32>
    %153 = vector.multi_reduction <add>, %152, %cst_70 [1] : vector<2x16xf32> to vector<2xf32>
    %154 = vector.shape_cast %153 : vector<2xf32> to vector<2x1xf32>
    %155 = arith.mulf %154, %6 : vector<2x1xf32>
    %cst_71 = arith.constant dense<0.000000e+00> : vector<16x1xf32>
    %156 = tpu.matmul %3, %155, %cst_71 {dimension_numbers = #tpu.dot_dimension_numbers<[1], [0], [0], [1], [0, 0, 1, 1], [], []>} : vector<16x2xf32>, vector<2x1xf32>, vector<16x1xf32> -> vector<16x1xf32>
    %157 = vector.broadcast %156 : vector<16x1xf32> to vector<16x16xf32>
    %158 = arith.subf %151, %157 : vector<16x16xf32>
    %159 = arith.mulf %158, %158 : vector<16x16xf32>
    %cst_72 = arith.constant dense<0.000000e+00> : vector<2x16xf32>
    %160 = tpu.matmul %4, %159, %cst_72 {dimension_numbers = #tpu.dot_dimension_numbers<[1], [0], [0], [1], [0, 0, 1, 1], [], []>} : vector<2x16xf32>, vector<16x16xf32>, vector<2x16xf32> -> vector<2x16xf32>
    %cst_73 = arith.constant dense<0.000000e+00> : vector<2xf32>
    %161 = vector.multi_reduction <add>, %160, %cst_73 [1] : vector<2x16xf32> to vector<2xf32>
    %162 = vector.shape_cast %161 : vector<2xf32> to vector<2x1xf32>
    %163 = arith.mulf %162, %6 : vector<2x1xf32>
    %cst_74 = arith.constant 9.99999974E-6 : f32
    %164 = vector.broadcast %cst_74 : f32 to vector<2x1xf32>
    %165 = arith.addf %163, %164 : vector<2x1xf32>
    %166 = math.rsqrt %165 : vector<2x1xf32>
    %cst_75 = arith.constant dense<0.000000e+00> : vector<16x1xf32>
    %167 = tpu.matmul %3, %166, %cst_75 {dimension_numbers = #tpu.dot_dimension_numbers<[1], [0], [0], [1], [0, 0, 1, 1], [], []>} : vector<16x2xf32>, vector<2x1xf32>, vector<16x1xf32> -> vector<16x1xf32>
    %168 = vector.broadcast %167 : vector<16x1xf32> to vector<16x16xf32>
    %169 = arith.mulf %158, %168 : vector<16x16xf32>
    %c0_76 = arith.constant 0 : index
    %c0_77 = arith.constant 0 : index
    %170 = vector.load %arg17[%c0_76, %c0_77] : memref<1x16xf32, #tpu.memory_space<vmem>>, vector<1x16xf32>
    %171 = vector.broadcast %170 : vector<1x16xf32> to vector<16x16xf32>
    %172 = arith.mulf %169, %171 : vector<16x16xf32>
    %c0_78 = arith.constant 0 : index
    %c0_79 = arith.constant 0 : index
    %173 = vector.load %arg18[%c0_78, %c0_79] : memref<1x16xf32, #tpu.memory_space<vmem>>, vector<1x16xf32>
    %174 = vector.broadcast %173 : vector<1x16xf32> to vector<16x16xf32>
    %175 = arith.addf %172, %174 : vector<16x16xf32>
    %c0_80 = arith.constant 0 : index
    %c0_81 = arith.constant 0 : index
    %176 = vector.load %arg19[%c0_80, %c0_81] : memref<1x16xf32, #tpu.memory_space<vmem>>, vector<1x16xf32>
    %177 = vector.broadcast %176 : vector<1x16xf32> to vector<16x16xf32>
    %178 = arith.mulf %175, %177 : vector<16x16xf32>
    %cst_82 = arith.constant dense<0.000000e+00> : vector<16xf32>
    %179 = vector.multi_reduction <add>, %178, %cst_82 [1] : vector<16x16xf32> to vector<16xf32>
    %180 = vector.shape_cast %179 : vector<16xf32> to vector<16x1xf32>
    %181 = math.tanh %180 : vector<16x1xf32>
    %cst_83 = arith.constant 0.000000e+00 : f32
    %182 = vector.broadcast %cst_83 : f32 to vector<16x111xf32>
    %183 = tpu.concatenate %175, %181, %182 in 1 : vector<16x16xf32>, vector<16x1xf32>, vector<16x111xf32> -> vector<16x128xf32>
    %c0_84 = arith.constant 0 : index
    %c0_85 = arith.constant 0 : index
    %184 = vector.load %arg20[%c0_84, %c0_85] : memref<16x128xf32, #tpu.memory_space<vmem>>, vector<16x128xf32>
    tpu.vector_store %arg20[%c0_84, %c0_85], %183 {strides = array<i32>} : memref<16x128xf32, #tpu.memory_space<vmem>>, vector<16x128xf32>,
    return
  }
  func.func @transform_0(%arg0: i32) -> (i32, i32) {
    %c0_i32 = arith.constant 0 : i32
    %c0_i32_0 = arith.constant 0 : i32
    %c0_i32_1 = arith.constant 0 : i32
    return %c0_i32, %c0_i32_0 : i32, i32
  }
  func.func @transform_1(%arg0: i32) -> (i32, i32) {
    %c0_i32 = arith.constant 0 : i32
    %c0_i32_0 = arith.constant 0 : i32
    %c0_i32_1 = arith.constant 0 : i32
    return %c0_i32, %c0_i32_0 : i32, i32
  }
  func.func @transform_2(%arg0: i32) -> (i32, i32) {
    %c0_i32 = arith.constant 0 : i32
    %c0_i32_0 = arith.constant 0 : i32
    %c0_i32_1 = arith.constant 0 : i32
    return %c0_i32, %c0_i32_0 : i32, i32
  }
  func.func @transform_3(%arg0: i32) -> (i32, i32) {
    %c0_i32 = arith.constant 0 : i32
    %c0_i32_0 = arith.constant 0 : i32
    %c0_i32_1 = arith.constant 0 : i32
    return %c0_i32, %c0_i32_0 : i32, i32
  }
  func.func @transform_4(%arg0: i32) -> (i32, i32) {
    %c0_i32 = arith.constant 0 : i32
    %c0_i32_0 = arith.constant 0 : i32
    %c0_i32_1 = arith.constant 0 : i32
    return %c0_i32, %c0_i32_0 : i32, i32
  }
  func.func @transform_5(%arg0: i32) -> (i32, i32) {
    %c0_i32 = arith.constant 0 : i32
    %c0_i32_0 = arith.constant 0 : i32
    %c0_i32_1 = arith.constant 0 : i32
    return %c0_i32, %c0_i32_0 : i32, i32
  }
  func.func @transform_6(%arg0: i32) -> (i32, i32) {
    %c0_i32 = arith.constant 0 : i32
    %c0_i32_0 = arith.constant 0 : i32
    %c0_i32_1 = arith.constant 0 : i32
    return %c0_i32, %c0_i32_0 : i32, i32
  }
  func.func @transform_7(%arg0: i32) -> (i32, i32) {
    %c0_i32 = arith.constant 0 : i32
    %c0_i32_0 = arith.constant 0 : i32
    %c0_i32_1 = arith.constant 0 : i32
    return %c0_i32, %c0_i32_0 : i32, i32
  }
  func.func @transform_8(%arg0: i32) -> (i32, i32) {
    %c0_i32 = arith.constant 0 : i32
    %c0_i32_0 = arith.constant 0 : i32
    %c0_i32_1 = arith.constant 0 : i32
    return %c0_i32, %c0_i32_0 : i32, i32
  }
  func.func @transform_9(%arg0: i32) -> (i32, i32) {
    %c0_i32 = arith.constant 0 : i32
    %c0_i32_0 = arith.constant 0 : i32
    %c0_i32_1 = arith.constant 0 : i32
    return %c0_i32, %c0_i32_0 : i32, i32
  }
  func.func @transform_10(%arg0: i32) -> (i32, i32) {
    %c0_i32 = arith.constant 0 : i32
    %c0_i32_0 = arith.constant 0 : i32
    %c0_i32_1 = arith.constant 0 : i32
    return %c0_i32, %c0_i32_0 : i32, i32
  }
  func.func @transform_11(%arg0: i32) -> (i32, i32) {
    %c0_i32 = arith.constant 0 : i32
    %c0_i32_0 = arith.constant 0 : i32
    %c0_i32_1 = arith.constant 0 : i32
    return %c0_i32, %c0_i32_0 : i32, i32
  }
  func.func @transform_12(%arg0: i32) -> (i32, i32) {
    %c0_i32 = arith.constant 0 : i32
    %c0_i32_0 = arith.constant 0 : i32
    %c0_i32_1 = arith.constant 0 : i32
    return %c0_i32, %c0_i32_0 : i32, i32
  }
  func.func @transform_13(%arg0: i32) -> (i32, i32) {
    %c0_i32 = arith.constant 0 : i32
    %c0_i32_0 = arith.constant 0 : i32
    %c0_i32_1 = arith.constant 0 : i32
    return %c0_i32, %c0_i32_0 : i32, i32
  }
  func.func @transform_14(%arg0: i32) -> (i32, i32) {
    %c0_i32 = arith.constant 0 : i32
    %c0_i32_0 = arith.constant 0 : i32
    %c0_i32_1 = arith.constant 0 : i32
    return %c0_i32, %c0_i32_0 : i32, i32
  }
  func.func @transform_15(%arg0: i32) -> (i32, i32) {
    %c0_i32 = arith.constant 0 : i32
    %c0_i32_0 = arith.constant 0 : i32
    %c0_i32_1 = arith.constant 0 : i32
    return %c0_i32, %c0_i32_0 : i32, i32
  }
  func.func @transform_16(%arg0: i32) -> (i32, i32) {
    %c0_i32 = arith.constant 0 : i32
    %c0_i32_0 = arith.constant 0 : i32
    %c0_i32_1 = arith.constant 0 : i32
    return %c0_i32, %c0_i32_0 : i32, i32
  }
  func.func @transform_17(%arg0: i32) -> (i32, i32) {
    %c0_i32 = arith.constant 0 : i32
    %c0_i32_0 = arith.constant 0 : i32
    %c0_i32_1 = arith.constant 0 : i32
    return %c0_i32, %c0_i32_0 : i32, i32
  }
  func.func @transform_18(%arg0: i32) -> (i32, i32) {
    %c0_i32 = arith.constant 0 : i32
    %c0_i32_0 = arith.constant 0 : i32
    %c0_i32_1 = arith.constant 0 : i32
    return %c0_i32, %c0_i32_0 : i32, i32
  }
  func.func @transform_19(%arg0: i32) -> (i32, i32) {
    %c0_i32 = arith.constant 0 : i32
    %c0_i32_0 = arith.constant 0 : i32
    %c0_i32_1 = arith.constant 0 : i32
    return %c0_i32, %c0_i32_0 : i32, i32
  }
}

</mosaic_0001>

<bundles_post_ra>
// kernel: tpu_custom_call.1
= control target key start
LH: loop header
LB: loop body
LE: loop exit
PB: predicated region body
PF: predicated region fallthrough
CT: control target
= control target key end

     0   :  { %s1486_s0 = inlined_call_operand.vmem [shape: f32[16,8], index: 0, kind: input, shape index: {}]   ;;  %s1487_s1 = inlined_call_operand.vmem [shape: f32[16,16], index: 1, kind: input, shape index: {}]   ;;  %s1488_s2 = inlined_call_operand.vmem [shape: f32[16,2], index: 2, kind: input, shape index: {}]   ;;  %s1489_s3 = inlined_call_operand.vmem [shape: f32[2,16], index: 3, kind: input, shape index: {}]   ;;  %s1490_s4 = inlined_call_operand.vmem [shape: f32[2,1], index: 4, kind: input, shape index: {}]   ;;  %s1491_s5 = inlined_call_operand.vmem [shape: f32[2,1], index: 5, kind: input, shape index: {}]   ;;  %s1492_s6 = inlined_call_operand.vmem [shape: f32[8,18], index: 6, kind: input, shape index: {}]   ;;  %s1493_s7 = inlined_call_operand.vmem [shape: f32[1,16], index: 7, kind: input, shape index: {}]   ;;  %s1494_s8 = inlined_call_operand.vmem [shape: f32[1,16], index: 8, kind: input, shape index: {}]   ;;  %s1495_s9 = inlined_call_operand.vmem [shape: f32[1,16], index: 9, kind: input, shape index: {}]   ;;  %s1496_s10 = inlined_call_operand.vmem [shape: f32[16,18], index: 10, kind: input, shape index: {}]   ;;  %s1497_s11 = inlined_call_operand.vmem [shape: f32[1,16], index: 11, kind: input, shape index: {}]   ;;  %s1498_s12 = inlined_call_operand.vmem [shape: f32[1,16], index: 12, kind: input, shape index: {}]   ;;  %s1499_s13 = inlined_call_operand.vmem [shape: f32[1,16], index: 13, kind: input, shape index: {}]   ;;  %s1500_s14 = inlined_call_operand.hbm [shape: f32[16,18], index: 14, kind: input, shape index: {}]   ;;  %s1501_s15 = inlined_call_operand.vmem [shape: f32[1,16], index: 15, kind: input, shape index: {}]   ;;  %s1502_s16 = inlined_call_operand.vmem [shape: f32[1,16], index: 16, kind: input, shape index: {}]   ;;  %s1503_s17 = inlined_call_operand.vmem [shape: f32[1,16], index: 17, kind: input, shape index: {}]   ;;  %s1504_s18 = inlined_call_operand.vmem [shape: f32[1,16], index: 18, kind: input, shape index: {}]   ;;  %s1505_s19 = inlined_call_operand.hbm [shape: f32[16,128], index: 19, kind: output, shape index: {}]  }
   0x1   :  { %1509 = sst [smem:[#allocation8_spill]] %s1486_s0 }
   0x2   :  { %1510 = sst [smem:[#allocation9_spill]] %s1487_s1 }
   0x3   :  { %1511 = sst [smem:[#allocation10_spill]] %s1488_s2 }
   0x4   :  { %1512 = sst [smem:[#allocation11_spill]] %s1489_s3 }
   0x5   :  { %24 = vsyncpa [#allocation3], 0 }
   0x6   :  { %25 = vsyncpa [#allocation4], 0  ;;  %s58_s20 = sshll.u32 %s1500_s14, 4  ;;  %s1180_s21 = smov [#allocation2]   ;;  %s59_s20 = int_to_ptr.hbm [resolvable:$true] %s58_s20 }
   0x7   :  { %s60_s1 = sshll.u32 %s1180_s21, 4  ;;  %s1181_s22 = smov 128   ;;  %s61_s1 = int_to_ptr.vmem [resolvable:$true] %s60_s1 }
   0x8   :  { %s1182_s2 = smov 8  }
   0x9   :  { %66 = dma.hbm_to_vmem [thread:$0]  %s59_s20, 256, %s61_s1, [#allocation3], %s1181_s22, %s1181_s22, %s1182_s2  }
   0xa   :  { %1176 = dma.done.wait [#allocation3], 256  }
   0xb   :  { %1177 = vsyncadd [#allocation3], 4294967040  ;;  %v1183_v0 = vmov 17   ;;  %vm91_vm0 = vcmask 64512   ;;  %v90_v1 = vld [vmem:[%s1492_s6] sm:$0xff]  ;;  %s1513_s3 = sld [smem:[#allocation8_spill]] }
   0xc   :  { %1073 = vset.pattern.permute.xlu1 %v1183_v0  ;;  %113 = vmatpush.msra.mxu0 %v90_v1  ;;  %s1184_s28 = smov 112   ;;  %s1514_s0 = sld [smem:[#allocation9_spill]]  ;;  %vm180_vm5 = vcmask 130048   ;;  %v1084_v41 = vld [vmem:[%s1493_s7] ss:$0 sm:$0xff]  ;;  %vm259_vm6 = vcmask 123904  }
   0xd   :  { %s1515_s14 = sld [smem:[#allocation11_spill]]  ;;  %v1185_v48 = vmov 0   ;;  %v1344_v49 = vld [vmem:[%s1490_s4] sm:$0x3]  ;;  %vm271_vm7 = vcmask 1041408   ;;  %vm264_vm8 = vcmask 15360  }
   0xe   :  { %1074 = vset.pattern.permute.xlu0 %v1185_v48  ;;  %s1516_s27 = sld [smem:[#allocation10_spill]]  ;;  %s1016_s4 = sshll.u32 %s1505_s19, 4  ;;  %s1017_s4 = int_to_ptr.hbm [resolvable:$true] %s1016_s4 }
  0x11   :  { %v88_v2 = vld [vmem:[%s1513_s3] sm:$0xff]  ;;  %v89_v3 = vld [vmem:[%s1513_s3 + $0x8] sm:$0xff] }
  0x12   :  { %1029 = vmatmul.msk.f32.vlgmr.msra.gmra.mxu0 %vm91_vm0, %v88_v2  ;;  %v1308_v11 = vld [vmem:[%s1514_s0 + $0x8] sm:$0xff]  ;;  %v1313_v12 = vld [vmem:[%s1514_s0] sm:$0xff] }
  0x13   :  { %vm82_vm1 = vcmp.gt.f32.partialorder %v1308_v11, 0.0  ;;  %vm81_vm2 = vcmp.gt.f32.partialorder %v1313_v12, 0.0  ;;  %v1333_v45 = vld [vmem:[%s1515_s14] sm:$0x3] }
  0x14   :  { %v1350_v52 = vld [vmem:[%s1516_s27] sm:$0xff]  ;;  %v1358_v53 = vld [vmem:[%s1516_s27 + $0x8] sm:$0xff] }
  0x1a   :  { %1030 = vmatmul.msk.f32.gmra.mxu0 %vm91_vm0, %v89_v3 }
  0x8f   :  { %v115_v4 = vpop.f32.mrf.mxu0 }
  0x90   :  { %162 = vperm.xlu1 %1073, %v115_v4   ;;  %123 = vrot.lane.b32.xlu0 %v115_v4, %s1184_s28 }
  0x97   :  { %v118_v5 = vpop.f32.mrf.mxu0 }
  0x98   :  { %166 = vperm.xlu1 %1073, %v118_v5   ;;  %125 = vrot.lane.b32.xlu0 %v118_v5, %s1184_s28 }
  0x99   :  { %227 = vmatpush.msra.mxu1 %v118_v5 }
  0x9b   :  { %228 = vmatpush.msra.mxu1 %v115_v4 }
  0xa0   :  { %1075 = vset.pattern.permute.xlu1 %v1185_v48 }
 0x102   :  { %v124_v6 = vpop.permute.xlu0 %123  ;;  %v163_v8 = vpop.permute.xlu1 %162 }
 0x103   :  { %129 = vxpose.xlu2.b32.start [1/2] (short) (narrow) %v124_v6, 8 }
 0x10a   :  { %v126_v7 = vpop.permute.xlu0 %125  ;;  %v167_v13 = vpop.permute.xlu1 %166 }
 0x10b   :  { %130 = vxpose.xlu2.b32.end [2/2] (short) (narrow) %v126_v7, 8 }
 0x16d   :  { %1078 = vset.pattern.permute.xlu2 %v1185_v48 }
 0x19c   :  { %v145_v9 = vpop.trf.xlu2 }
 0x19d   :  { %v169_v10 = vperm.slane %v145_v9, 0 }
 0x19f   :  { %v170_v14 = vadd.f32 %v169_v10, %v163_v8  ;;  %v171_v15 = vadd.f32 %v169_v10, %v167_v13 }
 0x1a1   :  { %vm173_vm3 = vcmp.gt.f32.partialorder %v171_v15, 0.0  ;;  %v175_v16 = vmul.f32 0.2, %v171_v15  ;;  %vm172_vm4 = vcmp.gt.f32.partialorder %v170_v14, 0.0  ;;  %v174_v17 = vmul.f32 0.2, %v170_v14 }
 0x1a3   :  { %v177_v18 = vsel %vm173_vm3, %v171_v15, %v175_v16  ;;  %v176_v19 = vsel %vm172_vm4, %v170_v14, %v174_v17  ;;  %v400_v15 = vld [vmem:[%s1496_s10 + $0x8] sm:$0xff]  ;;  %v399_v16 = vld [vmem:[%s1496_s10] sm:$0xff] }
 0x1a4   :  { %v179_v20 = vsel %vm82_vm1, %v177_v18, -1e+30  ;;  %v178_v21 = vsel %vm81_vm2, %v176_v19, -1e+30  ;;  %v1085_v17 = vld [vmem:[%s1494_s8] ss:$0 sm:$0xff] }
 0x1a5   :  { %v184_v22 = vsel %vm180_vm5, %v179_v20, -inf  ;;  %v181_v23 = vsel %vm180_vm5, %v178_v21, -inf  ;;  %v1086_v19 = vld [vmem:[%s1495_s9] ss:$0 sm:$0xff] }
 0x1a6   :  { %185 = vmax.xlane.f32.xlu1 %v184_v22  ;;  %182 = vmax.xlane.f32.xlu0 %v181_v23 }
 0x219   :  { %v186_v24 = vpop.xlane.xlu1 %185  ;;  %v183_v25 = vpop.xlane.xlu0 %182 }
 0x21a   :  { %v188_v26 = vsub.f32 %v179_v20, %v186_v24  ;;  %v187_v27 = vsub.f32 %v178_v21, %v183_v25 }
 0x21c   :  { %v191_v28 = vmul.f32 1.442695, %v188_v26  ;;  %v189_v29 = vmul.f32 1.442695, %v187_v27 }
 0x21e   :  { %1094 = vpow2.f32 %v191_v28 }
 0x21f   :  { %1096 = vpow2.f32 %v189_v29 }
 0x224   :  { %v1095_v30 = vpop.eup %1094 }
 0x225   :  { %v1097_v31 = vpop.eup %1096  ;;  %v196_v32 = vsel %vm180_vm5, %v1095_v30, 0.0 }
 0x226   :  { %197 = vadd.xlane.f32.xlu0 %v196_v32  ;;  %v193_v33 = vsel %vm180_vm5, %v1097_v31, 0.0 }
 0x227   :  { %194 = vadd.xlane.f32.xlu2 %v193_v33 }
 0x299   :  { %v198_v35 = vpop.xlane.xlu0 %197 }
 0x29a   :  { %v195_v34 = vpop.xlane.xlu2 %194 }
 0x29b   :  { %1098 = vrcp.f32 %v195_v34 }
 0x29c   :  { %1100 = vrcp.f32 %v198_v35 }
 0x2a1   :  { %v1099_v36 = vpop.eup %1098 }
 0x2a2   :  { %v201_v37 = vmul.f32 %v1099_v36, %v1097_v31  ;;  %v1101_v38 = vpop.eup %1100 }
 0x2a3   :  { %v202_v39 = vmul.f32 %v1101_v38, %v1095_v30 }
 0x2a4   :  { %1031 = vmatmul.msk.f32.vlgmr.msra.gmra.mxu1 %vm180_vm5, %v201_v37 }
 0x2ac   :  { %1032 = vmatmul.msk.f32.gmra.mxu1 %vm180_vm5, %v202_v39 }
 0x321   :  { %v230_v40 = vpop.f32.mrf.mxu1 }
 0x322   :  { %v231_v44 = vadd.f32 %v1084_v41, %v230_v40 }
 0x329   :  { %v233_v42 = vpop.f32.mrf.mxu1 }
 0x32a   :  { %v234_v43 = vadd.f32 %v1084_v41, %v233_v42 }
 0x32c   :  { %253 = vmatpush.msrb.mxu0 %v234_v43 }
 0x32e   :  { %254 = vmatpush.msrb.mxu0 %v231_v44 }
 0x32f   :  { %1033 = vmatmul.msk.f32.vlgmr.msrb.gmra.mxu0 %vm180_vm5, %v1333_v45 }
 0x3ac   :  { %v256_v46 = vpop.f32.mrf.mxu0 }
 0x3ad   :  { %v260_v47 = vsel %vm259_vm6, %v256_v46, 0.0 }
 0x3ae   :  { %261 = vadd.xlane.f32.xlu1 %v260_v47 }
 0x421   :  { %v262_v50 = vpop.xlane.xlu1 %261 }
 0x422   :  { %v263_v51 = vmul.f32 %v262_v50, %v1344_v49 }
 0x424   :  { %1034 = vmatpush.msk.msra.mxu3 %vm271_vm7, %v263_v51 }
 0x425   :  { %1035 = vmatmul.msk.f32.vlgmr.msra.gmra.mxu3 %vm264_vm8, %v1350_v52 }
 0x426   :  { %421 = vmatpush.msrb.mxu3 %v400_v15 }
 0x428   :  { %422 = vmatpush.msrb.mxu3 %v399_v16 }
 0x42d   :  { %1036 = vmatmul.msk.f32.gmra.mxu3 %vm264_vm8, %v1358_v53 }
 0x4a8   :  { %v292_v54 = vpop.f32.mrf.mxu3 }
 0x4a9   :  { %300 = vperm.xlu1 %1075, %v292_v54  }
 0x4b0   :  { %v295_v55 = vpop.f32.mrf.mxu3 }
 0x4b1   :  { %305 = vperm.xlu0 %1074, %v295_v55   ;;  %1077 = vset.pattern.permute.xlu1 %v1183_v0 }
 0x51b   :  { %v301_v56 = vpop.permute.xlu1 %300 }
 0x51c   :  { %v308_v58 = vsub.f32 %v231_v44, %v301_v56 }
 0x51e   :  { %v310_v61 = vmul.f32 %v308_v58, %v308_v58 }
 0x523   :  { %v306_v57 = vpop.permute.xlu0 %305 }
 0x524   :  { %v309_v59 = vsub.f32 %v234_v43, %v306_v57 }
 0x526   :  { %v311_v60 = vmul.f32 %v309_v59, %v309_v59 }
 0x528   :  { %326 = vmatpush.msra.mxu2 %v311_v60 }
 0x52a   :  { %327 = vmatpush.msra.mxu2 %v310_v61 }
 0x52b   :  { %1037 = vmatmul.msk.f32.vlgmr.msra.gmra.mxu2 %vm180_vm5, %v1333_v45 }
 0x5ae   :  { %v329_v62 = vpop.f32.mrf.mxu2 }
 0x5af   :  { %v332_v63 = vsel %vm259_vm6, %v329_v62, 0.0 }
 0x5b0   :  { %333 = vadd.xlane.f32.xlu1 %v332_v63 }
 0x623   :  { %v334_v1 = vpop.xlane.xlu1 %333 }
 0x624   :  { %v335_v2 = vmul.f32 %v334_v1, %v1344_v49 }
 0x626   :  { %v336_v3 = vadd.f32 1e-05, %v335_v2 }
 0x628   :  { %1102 = vrsqrt.f32 %v336_v3  ;;  %vm343_vm10 = vweird.f32 %v336_v3 }
 0x62e   :  { %v1103_v4 = vpop.eup %1102 }
 0x62f   :  { %v338_v5 = vmul.f32 %v1103_v4, %v336_v3  ;;  %vm344_vm9 = vweird.f32 %v1103_v4 }
 0x630   :  { %vm345_vm11 = vmor %vm343_vm10, %vm344_vm9 }
 0x631   :  { %v339_v6 = vmul.f32 %v1103_v4, %v338_v5 }
 0x633   :  { %v340_v7 = vmul.f32 0.5, %v339_v6  ;;  %v1087_v6 = vld [vmem:[%s1497_s11] ss:$0 sm:$0xff] }
 0x635   :  { %v341_v8 = vsub.f32 1.5, %v340_v7 }
 0x637   :  { %v342_v9 = vmul.f32 %v1103_v4, %v341_v8 }
 0x639   :  { %v346_v10 = vsel %vm345_vm11, %v1103_v4, %v342_v9 }
 0x63a   :  { %1038 = vmatpush.msk.msra.mxu0 %vm271_vm7, %v346_v10 }
 0x63b   :  { %1039 = vmatmul.msk.f32.vlgmr.msra.gmra.mxu0 %vm264_vm8, %v1350_v52 }
 0x643   :  { %1040 = vmatmul.msk.f32.gmra.mxu0 %vm264_vm8, %v1358_v53 }
 0x6b8   :  { %v367_v13 = vpop.f32.mrf.mxu0 }
 0x6b9   :  { %375 = vperm.xlu0 %1074, %v367_v13  }
 0x6c0   :  { %v370_v14 = vpop.f32.mrf.mxu0 }
 0x6c1   :  { %380 = vperm.xlu0 %1074, %v370_v14  }
 0x6c9   :  { %1076 = vset.pattern.permute.xlu0 %v1183_v0 }
 0x72b   :  { %v376_v18 = vpop.permute.xlu0 %375 }
 0x72c   :  { %v383_v20 = vmul.f32 %v376_v18, %v308_v58 }
 0x72e   :  { %v389_v21 = vmul.f32 %v1085_v17, %v383_v20 }
 0x730   :  { %v395_v22 = vadd.f32 %v1086_v19, %v389_v21 }
 0x732   :  { %v397_v23 = vmax.f32 %v395_v22, 0.0 }
 0x733   :  { %v381_v24 = vpop.permute.xlu0 %380 }
 0x734   :  { %v384_v25 = vmul.f32 %v381_v24, %v309_v59  ;;  %1041 = vmatmul.msk.f32.vlgmr.msrb.gmra.mxu3 %vm180_vm5, %v397_v23 }
 0x736   :  { %v390_v26 = vmul.f32 %v1085_v17, %v384_v25 }
 0x738   :  { %v396_v27 = vadd.f32 %v1086_v19, %v390_v26 }
 0x73a   :  { %v398_v28 = vmax.f32 %v396_v27, 0.0 }
 0x73c   :  { %1042 = vmatmul.msk.f32.gmra.mxu3 %vm180_vm5, %v398_v28 }
 0x7b7   :  { %v424_v29 = vpop.f32.mrf.mxu3 }
 0x7b8   :  { %432 = vrot.lane.b32.xlu0 %v424_v29, %s1184_s28 }
 0x7bf   :  { %v427_v30 = vpop.f32.mrf.mxu3 }
 0x7c0   :  { %471 = vperm.xlu0 %1076, %v424_v29   ;;  %475 = vperm.xlu1 %1077, %v427_v30  }
 0x7c1   :  { %434 = vrot.lane.b32.xlu2 %v427_v30, %s1184_s28  ;;  %535 = vmatpush.msrb.mxu1 %v427_v30 }
 0x7c3   :  { %536 = vmatpush.msrb.mxu1 %v424_v29 }
 0x7c8   :  { %1079 = vset.pattern.permute.xlu1 %v1185_v48 }
 0x81b   :  { %v435_v32 = vpop.permute.xlu2 %434 }
 0x82a   :  { %v433_v31 = vpop.permute.xlu0 %432 }
 0x82b   :  { %438 = vxpose.xlu0.b32.start [1/2] (short) (narrow) %v433_v31, 8 }
 0x832   :  { %v472_v33 = vpop.permute.xlu0 %471  ;;  %v476_v36 = vpop.permute.xlu1 %475 }
 0x833   :  { %439 = vxpose.xlu0.b32.end [2/2] (short) (narrow) %v435_v32, 8 }
 0x89a   :  { %1083 = vset.pattern.permute.xlu0 %v1185_v48 }
 0x8cf   :  { %v454_v34 = vpop.trf.xlu0 }
 0x8d0   :  { %v478_v35 = vperm.slane %v454_v34, 0 }
 0x8d2   :  { %v479_v37 = vadd.f32 %v478_v35, %v472_v33  ;;  %v480_v38 = vadd.f32 %v478_v35, %v476_v36 }
 0x8d4   :  { %vm482_vm12 = vcmp.gt.f32.partialorder %v480_v38, 0.0  ;;  %v484_v39 = vmul.f32 0.2, %v480_v38  ;;  %vm481_vm13 = vcmp.gt.f32.partialorder %v479_v37, 0.0  ;;  %v483_v40 = vmul.f32 0.2, %v479_v37 }
 0x8d6   :  { %v486_v41 = vsel %vm482_vm12, %v480_v38, %v484_v39  ;;  %v485_v42 = vsel %vm481_vm13, %v479_v37, %v483_v40  ;;  %v696_v37 = vld [vmem:[#allocation2 + $0x8] sm:$0xff]  ;;  %v695_v38 = vld [vmem:[#allocation2] sm:$0xff] }
 0x8d7   :  { %v488_v43 = vsel %vm82_vm1, %v486_v41, -1e+30  ;;  %v487_v44 = vsel %vm81_vm2, %v485_v42, -1e+30  ;;  %717 = vmatpush.msra.mxu1 %v696_v37  ;;  %v1088_v39 = vld [vmem:[%s1498_s12] ss:$0 sm:$0xff] }
 0x8d8   :  { %v492_v46 = vsel %vm180_vm5, %v488_v43, -inf  ;;  %v489_v47 = vsel %vm180_vm5, %v487_v44, -inf  ;;  %v1089_v41 = vld [vmem:[%s1499_s13] ss:$0 sm:$0xff] }
 0x8d9   :  { %493 = vmax.xlane.f32.xlu1 %v492_v46  ;;  %490 = vmax.xlane.f32.xlu2 %v489_v47 }
 0x8da   :  { %718 = vmatpush.msra.mxu1 %v695_v38 }
 0x94c   :  { %v494_v50 = vpop.xlane.xlu1 %493  ;;  %v491_v51 = vpop.xlane.xlu2 %490 }
 0x94d   :  { %v496_v54 = vsub.f32 %v488_v43, %v494_v50  ;;  %v495_v55 = vsub.f32 %v487_v44, %v491_v51 }
 0x94f   :  { %v499_v56 = vmul.f32 1.442695, %v496_v54  ;;  %v497_v57 = vmul.f32 1.442695, %v495_v55 }
 0x951   :  { %1104 = vpow2.f32 %v499_v56 }
 0x952   :  { %1106 = vpow2.f32 %v497_v57 }
 0x957   :  { %v1105_v58 = vpop.eup %1104 }
 0x958   :  { %v1107_v59 = vpop.eup %1106  ;;  %v504_v60 = vsel %vm180_vm5, %v1105_v58, 0.0 }
 0x959   :  { %505 = vadd.xlane.f32.xlu2 %v504_v60  ;;  %v501_v61 = vsel %vm180_vm5, %v1107_v59, 0.0 }
 0x95a   :  { %502 = vadd.xlane.f32.xlu0 %v501_v61 }
 0x9cc   :  { %v506_v63 = vpop.xlane.xlu2 %505 }
 0x9cd   :  { %v503_v62 = vpop.xlane.xlu0 %502 }
 0x9ce   :  { %1108 = vrcp.f32 %v503_v62 }
 0x9cf   :  { %1110 = vrcp.f32 %v506_v63 }
 0x9d4   :  { %v1109_v1 = vpop.eup %1108 }
 0x9d5   :  { %v509_v2 = vmul.f32 %v1109_v1, %v1107_v59  ;;  %v1111_v3 = vpop.eup %1110 }
 0x9d6   :  { %v510_v4 = vmul.f32 %v1111_v3, %v1105_v58 }
 0x9d7   :  { %1043 = vmatmul.msk.f32.vlgmr.msrb.gmra.mxu1 %vm180_vm5, %v509_v2 }
 0x9df   :  { %1044 = vmatmul.msk.f32.gmra.mxu1 %vm180_vm5, %v510_v4 }
 0xa54   :  { %v538_v5 = vpop.f32.mrf.mxu1 }
 0xa55   :  { %v539_v9 = vadd.f32 %v1087_v6, %v538_v5 }
 0xa5c   :  { %v541_v7 = vpop.f32.mrf.mxu1 }
 0xa5d   :  { %v542_v8 = vadd.f32 %v1087_v6, %v541_v7 }
 0xa5f   :  { %558 = vmatpush.msrb.mxu2 %v542_v8 }
 0xa61   :  { %559 = vmatpush.msrb.mxu2 %v539_v9 }
 0xa62   :  { %1045 = vmatmul.msk.f32.vlgmr.msrb.gmra.mxu2 %vm180_vm5, %v1333_v45 }
 0xae5   :  { %v561_v10 = vpop.f32.mrf.mxu2 }
 0xae6   :  { %v564_v13 = vsel %vm259_vm6, %v561_v10, 0.0 }
 0xae7   :  { %565 = vadd.xlane.f32.xlu1 %v564_v13 }
 0xb5a   :  { %v566_v14 = vpop.xlane.xlu1 %565 }
 0xb5b   :  { %v567_v15 = vmul.f32 %v566_v14, %v1344_v49 }
 0xb5d   :  { %1046 = vmatpush.msk.msra.mxu2 %vm271_vm7, %v567_v15 }
 0xb5e   :  { %1047 = vmatmul.msk.f32.vlgmr.msra.gmra.mxu2 %vm264_vm8, %v1350_v52 }
 0xb66   :  { %1048 = vmatmul.msk.f32.gmra.mxu2 %vm264_vm8, %v1358_v53 }
 0xbe1   :  { %v588_v16 = vpop.f32.mrf.mxu2 }
 0xbe2   :  { %596 = vperm.xlu1 %1079, %v588_v16  }
 0xbe9   :  { %v591_v17 = vpop.f32.mrf.mxu2 }
 0xbea   :  { %601 = vperm.xlu2 %1078, %v591_v17  }
 0xbf2   :  { %1081 = vset.pattern.permute.xlu2 %v1183_v0 }
 0xc44   :  { %v602_v18 = vpop.permute.xlu2 %601 }
 0xc45   :  { %v605_v19 = vsub.f32 %v542_v8, %v602_v18 }
 0xc47   :  { %v607_v20 = vmul.f32 %v605_v19, %v605_v19 }
 0xc49   :  { %622 = vmatpush.msrb.mxu0 %v607_v20 }
 0xc54   :  { %v597_v21 = vpop.permute.xlu1 %596 }
 0xc55   :  { %v604_v22 = vsub.f32 %v539_v9, %v597_v21 }
 0xc57   :  { %v606_v23 = vmul.f32 %v604_v22, %v604_v22 }
 0xc59   :  { %623 = vmatpush.msrb.mxu0 %v606_v23 }
 0xc5a   :  { %1049 = vmatmul.msk.f32.vlgmr.msrb.gmra.mxu0 %vm180_vm5, %v1333_v45 }
 0xcd7   :  { %v625_v24 = vpop.f32.mrf.mxu0 }
 0xcd8   :  { %v628_v25 = vsel %vm259_vm6, %v625_v24, 0.0 }
 0xcd9   :  { %629 = vadd.xlane.f32.xlu2 %v628_v25 }
 0xd4c   :  { %v630_v26 = vpop.xlane.xlu2 %629 }
 0xd4d   :  { %v631_v27 = vmul.f32 %v630_v26, %v1344_v49  ;;  %v1090_v26 = vld [vmem:[%s1501_s15] ss:$0 sm:$0xff] }
 0xd4f   :  { %v632_v28 = vadd.f32 1e-05, %v631_v27 }
 0xd51   :  { %1112 = vrsqrt.f32 %v632_v28  ;;  %vm639_vm15 = vweird.f32 %v632_v28 }
 0xd57   :  { %v1113_v29 = vpop.eup %1112 }
 0xd58   :  { %v634_v30 = vmul.f32 %v1113_v29, %v632_v28  ;;  %vm640_vm14 = vweird.f32 %v1113_v29 }
 0xd59   :  { %vm641_vm0 = vmor %vm639_vm15, %vm640_vm14 }
 0xd5a   :  { %v635_v31 = vmul.f32 %v1113_v29, %v634_v30 }
 0xd5c   :  { %v636_v32 = vmul.f32 0.5, %v635_v31 }
 0xd5e   :  { %v637_v33 = vsub.f32 1.5, %v636_v32  ;;  %v87_v32 = vld [vmem:[%s1491_s5] sm:$0x3] }
 0xd60   :  { %v638_v34 = vmul.f32 %v1113_v29, %v637_v33 }
 0xd62   :  { %v642_v35 = vsel %vm641_vm0, %v1113_v29, %v638_v34 }
 0xd63   :  { %1050 = vmatpush.msk.msra.mxu3 %vm271_vm7, %v642_v35 }
 0xd64   :  { %1051 = vmatmul.msk.f32.vlgmr.msra.gmra.mxu3 %vm264_vm8, %v1350_v52 }
 0xd6c   :  { %1052 = vmatmul.msk.f32.gmra.mxu3 %vm264_vm8, %v1358_v53 }
 0xde7   :  { %v663_v49 = vpop.f32.mrf.mxu3 }
 0xde8   :  { %671 = vperm.xlu1 %1079, %v663_v49  }
 0xdef   :  { %v666_v36 = vpop.f32.mrf.mxu3 }
 0xdf0   :  { %676 = vperm.xlu1 %1079, %v666_v36  }
 0xdf8   :  { %1080 = vset.pattern.permute.xlu1 %v1183_v0 }
 0xe5a   :  { %v672_v40 = vpop.permute.xlu1 %671 }
 0xe5b   :  { %v679_v42 = vmul.f32 %v672_v40, %v604_v22 }
 0xe5d   :  { %v685_v43 = vmul.f32 %v1088_v39, %v679_v42 }
 0xe5f   :  { %v691_v44 = vadd.f32 %v1089_v41, %v685_v43 }
 0xe61   :  { %v693_v46 = vmax.f32 %v691_v44, 0.0 }
 0xe62   :  { %v677_v47 = vpop.permute.xlu1 %676 }
 0xe63   :  { %v680_v50 = vmul.f32 %v677_v47, %v605_v19  ;;  %1053 = vmatmul.msk.f32.vlgmr.msra.gmra.mxu1 %vm180_vm5, %v693_v46 }
 0xe65   :  { %v686_v0 = vmul.f32 %v1088_v39, %v680_v50 }
 0xe67   :  { %v692_v51 = vadd.f32 %v1089_v41, %v686_v0 }
 0xe69   :  { %v694_v54 = vmax.f32 %v692_v51, 0.0 }
 0xe6b   :  { %1054 = vmatmul.msk.f32.gmra.mxu1 %vm180_vm5, %v694_v54 }
 0xee0   :  { %v720_v55 = vpop.f32.mrf.mxu1 }
 0xee1   :  { %728 = vrot.lane.b32.xlu1 %v720_v55, %s1184_s28 }
 0xee8   :  { %v723_v56 = vpop.f32.mrf.mxu1 }
 0xee9   :  { %767 = vperm.xlu1 %1080, %v720_v55   ;;  %771 = vperm.xlu2 %1081, %v723_v56  }
 0xeea   :  { %831 = vmatpush.msra.mxu0 %v723_v56 }
 0xeec   :  { %832 = vmatpush.msra.mxu0 %v720_v55 }
 0xef1   :  { %730 = vrot.lane.b32.xlu1 %v723_v56, %s1184_s28  ;;  %1082 = vset.pattern.permute.xlu2 %v1185_v48 }
 0xf43   :  { %v772_v62 = vpop.permute.xlu2 %771 }
 0xf53   :  { %v729_v57 = vpop.permute.xlu1 %728 }
 0xf54   :  { %734 = vxpose.xlu1.b32.start [1/2] (short) (narrow) %v729_v57, 8 }
 0xf5b   :  { %v768_v58 = vpop.permute.xlu1 %767 }
 0xf63   :  { %v731_v59 = vpop.permute.xlu1 %730 }
 0xf64   :  { %735 = vxpose.xlu1.b32.end [2/2] (short) (narrow) %v731_v59, 8  ;;  %v1091_v59 = vld [vmem:[%s1502_s16] ss:$0 sm:$0xff]  ;;  %s1186_s16 = smov [#allocation5]  }
0x1000   :  { %v750_v60 = vpop.trf.xlu1 }
0x1001   :  { %v774_v61 = vperm.slane %v750_v60, 0 }
0x1003   :  { %v775_v63 = vadd.f32 %v774_v61, %v768_v58  ;;  %v776_v1 = vadd.f32 %v774_v61, %v772_v62  ;;  %v1092_v62 = vld [vmem:[%s1503_s17] ss:$0 sm:$0xff]  ;;  %s1014_s17 = sshll.u32 %s1186_s16, 4  ;;  %s1015_s17 = int_to_ptr.vmem [resolvable:$true] %s1014_s17 }
0x1005   :  { %vm778_vm3 = vcmp.gt.f32.partialorder %v776_v1, 0.0  ;;  %v780_v2 = vmul.f32 0.2, %v776_v1  ;;  %vm777_vm4 = vcmp.gt.f32.partialorder %v775_v63, 0.0  ;;  %v779_v3 = vmul.f32 0.2, %v775_v63 }
0x1007   :  { %v782_v4 = vsel %vm778_vm3, %v776_v1, %v780_v2  ;;  %v781_v5 = vsel %vm777_vm4, %v775_v63, %v779_v3 }
0x1008   :  { %v784_v6 = vsel %vm82_vm1, %v782_v4, -1e+30  ;;  %v783_v48 = vsel %vm81_vm2, %v781_v5, -1e+30 }
0x1009   :  { %v788_v7 = vsel %vm180_vm5, %v784_v6, -inf  ;;  %v785_v8 = vsel %vm180_vm5, %v783_v48, -inf }
0x100a   :  { %789 = vmax.xlane.f32.xlu0 %v788_v7  ;;  %786 = vmax.xlane.f32.xlu2 %v785_v8 }
0x107d   :  { %v787_v9 = vpop.xlane.xlu2 %786  ;;  %v790_v10 = vpop.xlane.xlu0 %789 }
0x107e   :  { %v791_v13 = vsub.f32 %v783_v48, %v787_v9  ;;  %v792_v15 = vsub.f32 %v784_v6, %v790_v10 }
0x1080   :  { %v793_v14 = vmul.f32 1.442695, %v791_v13  ;;  %v795_v16 = vmul.f32 1.442695, %v792_v15 }
0x1082   :  { %1114 = vpow2.f32 %v793_v14 }
0x1083   :  { %1116 = vpow2.f32 %v795_v16 }
0x1088   :  { %v1115_v17 = vpop.eup %1114 }
0x1089   :  { %v797_v11 = vsel %vm180_vm5, %v1115_v17, 0.0  ;;  %v1117_v12 = vpop.eup %1116 }
0x108a   :  { %798 = vadd.xlane.f32.xlu0 %v797_v11  ;;  %v800_v18 = vsel %vm180_vm5, %v1117_v12, 0.0 }
0x1092   :  { %801 = vadd.xlane.f32.xlu0 %v800_v18 }
0x10fd   :  { %v799_v19 = vpop.xlane.xlu0 %798 }
0x10fe   :  { %1118 = vrcp.f32 %v799_v19 }
0x1104   :  { %v1119_v20 = vpop.eup %1118 }
0x1105   :  { %v805_v21 = vmul.f32 %v1119_v20, %v1115_v17  ;;  %v802_v22 = vpop.xlane.xlu0 %801 }
0x1106   :  { %1120 = vrcp.f32 %v802_v22 }
0x1107   :  { %1055 = vmatmul.msk.f32.vlgmr.msra.gmra.mxu0 %vm180_vm5, %v805_v21 }
0x110c   :  { %v1121_v23 = vpop.eup %1120 }
0x110d   :  { %v806_v24 = vmul.f32 %v1121_v23, %v1117_v12 }
0x110f   :  { %1056 = vmatmul.msk.f32.gmra.mxu0 %vm180_vm5, %v806_v24 }
0x1184   :  { %v834_v25 = vpop.f32.mrf.mxu0 }
0x1185   :  { %v835_v29 = vadd.f32 %v1090_v26, %v834_v25 }
0x118c   :  { %v837_v27 = vpop.f32.mrf.mxu0 }
0x118d   :  { %v838_v28 = vadd.f32 %v1090_v26, %v837_v27 }
0x118f   :  { %854 = vmatpush.msrb.mxu2 %v838_v28 }
0x1191   :  { %855 = vmatpush.msrb.mxu2 %v835_v29 }
0x1192   :  { %1057 = vmatmul.msk.f32.vlgmr.msrb.gmra.mxu2 %vm180_vm5, %v1333_v45 }
0x1215   :  { %v857_v30 = vpop.f32.mrf.mxu2 }
0x1216   :  { %v860_v31 = vsel %vm259_vm6, %v857_v30, 0.0 }
0x1217   :  { %861 = vadd.xlane.f32.xlu0 %v860_v31 }
0x128a   :  { %v862_v33 = vpop.xlane.xlu0 %861 }
0x128b   :  { %v863_v34 = vmul.f32 %v862_v33, %v87_v32 }
0x128d   :  { %1058 = vmatpush.msk.msrb.mxu3 %vm271_vm7, %v863_v34 }
0x128e   :  { %1059 = vmatmul.msk.f32.vlgmr.msrb.gmra.mxu3 %vm264_vm8, %v1350_v52 }
0x1296   :  { %1060 = vmatmul.msk.f32.gmra.mxu3 %vm264_vm8, %v1358_v53 }
0x1311   :  { %v884_v35 = vpop.f32.mrf.mxu3 }
0x1312   :  { %892 = vperm.xlu0 %1083, %v884_v35  }
0x1319   :  { %v887_v49 = vpop.f32.mrf.mxu3 }
0x131a   :  { %897 = vperm.xlu2 %1082, %v887_v49  }
0x1374   :  { %v898_v36 = vpop.permute.xlu2 %897 }
0x1375   :  { %v901_v37 = vsub.f32 %v838_v28, %v898_v36 }
0x1377   :  { %v903_v38 = vmul.f32 %v901_v37, %v901_v37 }
0x1379   :  { %918 = vmatpush.msrb.mxu1 %v903_v38 }
0x1384   :  { %v893_v39 = vpop.permute.xlu0 %892 }
0x1385   :  { %v900_v40 = vsub.f32 %v835_v29, %v893_v39 }
0x1387   :  { %v902_v41 = vmul.f32 %v900_v40, %v900_v40 }
0x1389   :  { %919 = vmatpush.msrb.mxu1 %v902_v41 }
0x138a   :  { %1061 = vmatmul.msk.f32.vlgmr.msrb.gmra.mxu1 %vm180_vm5, %v1333_v45 }
0x1407   :  { %v921_v42 = vpop.f32.mrf.mxu1 }
0x1408   :  { %v924_v43 = vsel %vm259_vm6, %v921_v42, 0.0  ;;  %vm1005_vm6 = vcmask 138240  }
0x1409   :  { %925 = vadd.xlane.f32.xlu1 %v924_v43 }
0x147c   :  { %v926_v44 = vpop.xlane.xlu1 %925 }
0x147d   :  { %v927_v46 = vmul.f32 %v926_v44, %v87_v32 }
0x147f   :  { %v928_v47 = vadd.f32 1e-05, %v927_v46 }
0x1481   :  { %1122 = vrsqrt.f32 %v928_v47  ;;  %vm935_vm2 = vweird.f32 %v928_v47 }
0x1487   :  { %v1123_v50 = vpop.eup %1122 }
0x1488   :  { %v930_v0 = vmul.f32 %v1123_v50, %v928_v47  ;;  %vm936_vm1 = vweird.f32 %v1123_v50 }
0x1489   :  { %vm937_vm9 = vmor %vm935_vm2, %vm936_vm1 }
0x148a   :  { %v931_v51 = vmul.f32 %v1123_v50, %v930_v0 }
0x148c   :  { %v932_v54 = vmul.f32 0.5, %v931_v51 }
0x148e   :  { %v933_v55 = vsub.f32 1.5, %v932_v54 }
0x1490   :  { %v934_v56 = vmul.f32 %v1123_v50, %v933_v55 }
0x1492   :  { %v938_v57 = vsel %vm937_vm9, %v1123_v50, %v934_v56 }
0x1493   :  { %1062 = vmatpush.msk.msra.mxu2 %vm271_vm7, %v938_v57 }
0x1494   :  { %1063 = vmatmul.msk.f32.vlgmr.msra.gmra.mxu2 %vm264_vm8, %v1350_v52  ;;  %v1093_v52 = vld [vmem:[%s1504_s18] ss:$0 sm:$0xff] }
0x149c   :  { %1064 = vmatmul.msk.f32.gmra.mxu2 %vm264_vm8, %v1358_v53 }
0x1517   :  { %v959_v45 = vpop.f32.mrf.mxu2 }
0x1518   :  { %967 = vperm.xlu2 %1082, %v959_v45  }
0x151f   :  { %v962_v58 = vpop.f32.mrf.mxu2 }
0x1520   :  { %972 = vperm.xlu2 %1082, %v962_v58  }
0x1572   :  { %v968_v60 = vpop.permute.xlu2 %967 }
0x1573   :  { %v975_v61 = vmul.f32 %v968_v60, %v900_v40 }
0x1575   :  { %v981_v63 = vmul.f32 %v1091_v59, %v975_v61 }
0x1577   :  { %v987_v53 = vadd.f32 %v1092_v62, %v981_v63 }
0x1579   :  { %v993_v1 = vmul.f32 %v1093_v52, %v987_v53 }
0x157a   :  { %v973_v2 = vpop.permute.xlu2 %972 }
0x157b   :  { %v976_v3 = vmul.f32 %v973_v2, %v901_v37  ;;  %v995_v4 = vsel %vm180_vm5, %v993_v1, 0.0 }
0x157c   :  { %996 = vadd.xlane.f32.xlu2 %v995_v4 }
0x157d   :  { %v982_v5 = vmul.f32 %v1091_v59, %v976_v3 }
0x157f   :  { %v988_v6 = vadd.f32 %v1092_v62, %v982_v5 }
0x1581   :  { %v994_v48 = vmul.f32 %v1093_v52, %v988_v6 }
0x1583   :  { %v998_v7 = vsel %vm180_vm5, %v994_v48, 0.0 }
0x1584   :  { %999 = vadd.xlane.f32.xlu0 %v998_v7 }
0x15ef   :  { %v997_v8 = vpop.xlane.xlu2 %996 }
0x15f0   :  { %1124 = vtanh.f32 %v997_v8 }
0x15f6   :  { %v1125_v9 = vpop.eup %1124 }
0x15f7   :  { %v1000_v10 = vpop.xlane.xlu0 %999  ;;  %v1003_v13 = vsel %vm180_vm5, %v987_v53, %v1125_v9 }
0x15f8   :  { %1126 = vtanh.f32 %v1000_v10  ;;  %v1006_v14 = vsel %vm1005_vm6, %v1003_v13, 0.0 }
0x15f9   :  { %1008 = vst [vmem:[#allocation5] sm:$0xff] %v1006_v14 }
0x15fe   :  { %v1127_v15 = vpop.eup %1126 }
0x15ff   :  { %v1004_v16 = vsel %vm180_vm5, %v988_v6, %v1127_v15 }
0x1600   :  { %v1007_v17 = vsel %vm1005_vm6, %v1004_v16, 0.0 }
0x1601   :  { %1009 = vst [vmem:[#allocation5 + $0x8] sm:$0xff] %v1007_v17 }
0x1602   :  { %1022 = dma.vmem_to_hbm [thread:$0]  %s1015_s17, 256, %s1017_s4, [#allocation4], %s1181_s22, %s1181_s22, %s1182_s2  }
0x1603   :  { %1178 = dma.done.wait [#allocation4], 256  }
0x1604   :  { %1179 = vsyncadd [#allocation4], 4294967040 }
0x1605   :  { %1027 = vsyncpa [#allocation3], 1 }
0x1606   :  { %1028 = vsyncpa [#allocation4], 1 }

</bundles_post_ra>
